<compile_context>
chip_gen: v5e
topology: v5e:2x2
jax: 0.10.0
libtpu: 0.0.40
codegen_flags: <defaults>
</compile_context>

<pallas_src>
import jax
import jax.numpy as jnp
from jax.experimental import pallas as pl
from jax.experimental.pallas import tpu as pltpu

LANE = 128  # lane-dense output width for the padded final layer


def _round_up(x, m):
    return ((x + m - 1) // m) * m


def mlp_kernel(x_ref, w1_ref, b1_ref, w2_ref, b2_ref, w3_ref, b3_ref, o_ref):
    # Layer 1: Linear(input_size -> hidden1) + tanh (bf16 MXU, f32 accumulate)
    h1 = jnp.dot(x_ref[...], w1_ref[...], preferred_element_type=jnp.float32)
    h1 = jnp.tanh(h1 + b1_ref[...])

    # Layer 2: Linear(hidden1 -> hidden2) + tanh
    h2 = jnp.dot(h1.astype(w2_ref.dtype), w2_ref[...],
                 preferred_element_type=jnp.float32)
    h2 = jnp.tanh(h2 + b2_ref[...])

    # Layer 3: Linear(hidden2 -> 128 padded) + sigmoid. Only column 0 is real;
    # padded weight/bias columns are zero, wrapper slices them away.
    h3 = jnp.dot(h2.astype(w3_ref.dtype), w3_ref[...],
                 preferred_element_type=jnp.float32)
    h3 = h3 + b3_ref[...]
    # sigmoid(x) == 0.5 * (1 + tanh(x / 2))  -> one EUP op per element.
    o_ref[...] = (0.5 * (jnp.tanh(0.5 * h3) + 1.0)).astype(o_ref.dtype)


def multilayer_nn_forward(x, params, *, block_m=512):
    """x: (batch, input_size) f32; params: dict of (in,out) weights, (1,out) biases."""
    w1, b1 = params["w1"], params["b1"]
    w2, b2 = params["w2"], params["b2"]
    w3, b3 = params["w3"], params["b3"]

    batch, in_size = x.shape
    h1 = w1.shape[1]
    h2 = w2.shape[1]
    out_size = w3.shape[1]

    # Pad the final layer to a lane-dense 128-wide output (zero pad columns).
    w3p = jnp.zeros((h2, LANE), jnp.float32).at[:, :out_size].set(w3)
    b3p = jnp.zeros((1, LANE), jnp.float32).at[:, :out_size].set(b3)

    # Batch tile: multiple of 8 sublanes; pad batch up to a multiple of it.
    tm = min(block_m, _round_up(batch, 8))
    pb = _round_up(batch, tm)
    xp = x
    if pb != batch:
        xp = jnp.zeros((pb, in_size), x.dtype).at[:batch].set(x)

    # bf16 MXU operands; accumulation stays f32 inside the kernel.
    xb = xp.astype(jnp.bfloat16)
    w1b = w1.astype(jnp.bfloat16)
    w2b = w2.astype(jnp.bfloat16)
    w3b = w3p.astype(jnp.bfloat16)

    grid = (pb // tm,)

    cost = pl.CostEstimate(
        flops=2 * pb * (in_size * h1 + h1 * h2 + h2 * LANE),
        transcendentals=pb * (h1 + h2 + LANE),
        bytes_accessed=(xb.size * 2 + pb * LANE * 4
                        + w1b.size * 2 + w2b.size * 2 + w3b.size * 2
                        + b1.size * 4 + b2.size * 4 + b3p.size * 4),
    )

    resident = lambda shape: pl.BlockSpec(shape, lambda i: (0, 0))

    out = pl.pallas_call(
        mlp_kernel,
        out_shape=jax.ShapeDtypeStruct((pb, LANE), jnp.float32),
        grid=grid,
        in_specs=[
            pl.BlockSpec((tm, in_size), lambda i: (i, 0)),
            resident(w1b.shape), resident(b1.shape),
            resident(w2b.shape), resident(b2.shape),
            resident(w3b.shape), resident(b3p.shape),
        ],
        out_specs=pl.BlockSpec((tm, LANE), lambda i: (i, 0)),
        compiler_params=pltpu.CompilerParams(
            dimension_semantics=("parallel",)),
        cost_estimate=cost,
    )(xb, w1b, b1, w2b, b2, w3b, b3p)

    return out[:batch, :out_size]


def init_params(key, input_size, hidden1, hidden2, output_size):
    """Deterministic init mimicking PyTorch nn.Linear (uniform +-1/sqrt(fan_in)).

    Weights stored already transposed to (in_features, out_features);
    biases stored as (1, out_features) for sublane broadcast in-kernel.
    """
    ks = jax.random.split(key, 6)

    def linear(kw, kb, fan_in, fan_out):
        bound = 1.0 / jnp.sqrt(jnp.float32(fan_in))
        w = jax.random.uniform(kw, (fan_in, fan_out), jnp.float32, -bound, bound)
        b = jax.random.uniform(kb, (1, fan_out), jnp.float32, -bound, bound)
        return w, b

    w1, b1 = linear(ks[0], ks[1], input_size, hidden1)
    w2, b2 = linear(ks[2], ks[3], hidden1, hidden2)
    w3, b3 = linear(ks[4], ks[5], hidden2, output_size)
    return {"w1": w1, "b1": b1, "w2": w2, "b2": b2, "w3": w3, "b3": b3}


def reference_forward(x, p):
    h1 = jnp.tanh(x @ p["w1"] + p["b1"])
    h2 = jnp.tanh(h1 @ p["w2"] + p["b2"])
    return jax.nn.sigmoid(h2 @ p["w3"] + p["b3"])


if __name__ == "__main__":
    # Small shapes consistent with the module: input_size = features after
    # dropping 'WindDir3pm' (pick 16), hidden_size1=64, hidden_size2=32,
    # output_size=1, batch=8.
    batch, input_size, hidden1, hidden2, output_size = 8, 16, 64, 32, 1

    key = jax.random.PRNGKey(0)
    kx, kp = jax.random.split(key)
    x = jax.random.normal(kx, (batch, input_size), jnp.float32)  # "standardized"
    params = init_params(kp, input_size, hidden1, hidden2, output_size)

    out = multilayer_nn_forward(x, params)
    out = jax.block_until_ready(out)

    ref = reference_forward(x, params)  # f32 reference
    assert out.shape == (batch, output_size)
    # bf16 MXU operands => compare with bf16-level tolerance.
    assert jnp.allclose(out, ref, atol=2e-2, rtol=2e-2)

    print("KERNEL_OK")
</pallas_src>

<mosaic_0001>
module attributes {stable_mosaic.version = 11 : i64} {
  func.func @mlp_kernel(%arg0: i32, %arg1: memref<8x16xbf16, #tpu.memory_space<vmem>>, %arg2: memref<16x64xbf16, #tpu.memory_space<vmem>>, %arg3: memref<1x64xf32, #tpu.memory_space<vmem>>, %arg4: memref<64x32xbf16, #tpu.memory_space<vmem>>, %arg5: memref<1x32xf32, #tpu.memory_space<vmem>>, %arg6: memref<32x128xbf16, #tpu.memory_space<vmem>>, %arg7: memref<1x128xf32, #tpu.memory_space<vmem>>, %arg8: memref<8x128xf32, #tpu.memory_space<vmem>>) attributes {dimension_semantics = [#tpu.dimension_semantics<parallel>], iteration_bounds = array<i64: 1>, scalar_prefetch = 0 : i64, scratch_operands = 0 : i64, tpu.core_type = #tpu.core_type<tc>, window_params = [{transform_indices = @transform_0, window_bounds = array<i64: 8, 16>}, {pipeline_mode = #tpu.pipeline_mode<synchronous>, transform_indices = @transform_1, window_bounds = array<i64: 16, 64>}, {pipeline_mode = #tpu.pipeline_mode<synchronous>, transform_indices = @transform_2, window_bounds = array<i64: 1, 64>}, {pipeline_mode = #tpu.pipeline_mode<synchronous>, transform_indices = @transform_3, window_bounds = array<i64: 64, 32>}, {pipeline_mode = #tpu.pipeline_mode<synchronous>, transform_indices = @transform_4, window_bounds = array<i64: 1, 32>}, {pipeline_mode = #tpu.pipeline_mode<synchronous>, transform_indices = @transform_5, window_bounds = array<i64: 32, 128>}, {pipeline_mode = #tpu.pipeline_mode<synchronous>, transform_indices = @transform_6, window_bounds = array<i64: 1, 128>}, {transform_indices = @transform_7, window_bounds = array<i64: 8, 128>}]} {
    %c0 = arith.constant 0 : index
    %c0_0 = arith.constant 0 : index
    %0 = vector.load %arg1[%c0, %c0_0] : memref<8x16xbf16, #tpu.memory_space<vmem>>, vector<8x16xbf16>
    %c0_1 = arith.constant 0 : index
    %c0_2 = arith.constant 0 : index
    %1 = vector.load %arg2[%c0_1, %c0_2] : memref<16x64xbf16, #tpu.memory_space<vmem>>, vector<16x64xbf16>
    %cst = arith.constant dense<0.000000e+00> : vector<8x64xf32>
    %2 = tpu.matmul %0, %1, %cst {dimension_numbers = #tpu.dot_dimension_numbers<[1], [0], [0], [1], [0, 0, 1, 1], [], []>} : vector<8x16xbf16>, vector<16x64xbf16>, vector<8x64xf32> -> vector<8x64xf32>
    %c0_3 = arith.constant 0 : index
    %c0_4 = arith.constant 0 : index
    %3 = vector.load %arg3[%c0_3, %c0_4] : memref<1x64xf32, #tpu.memory_space<vmem>>, vector<1x64xf32>
    %4 = vector.broadcast %3 : vector<1x64xf32> to vector<8x64xf32>
    %5 = arith.addf %2, %4 : vector<8x64xf32>
    %6 = math.tanh %5 : vector<8x64xf32>
    %7 = arith.truncf %6 : vector<8x64xf32> to vector<8x64xbf16>
    %c0_5 = arith.constant 0 : index
    %c0_6 = arith.constant 0 : index
    %8 = vector.load %arg4[%c0_5, %c0_6] : memref<64x32xbf16, #tpu.memory_space<vmem>>, vector<64x32xbf16>
    %cst_7 = arith.constant dense<0.000000e+00> : vector<8x32xf32>
    %9 = tpu.matmul %7, %8, %cst_7 {dimension_numbers = #tpu.dot_dimension_numbers<[1], [0], [0], [1], [0, 0, 1, 1], [], []>} : vector<8x64xbf16>, vector<64x32xbf16>, vector<8x32xf32> -> vector<8x32xf32>
    %c0_8 = arith.constant 0 : index
    %c0_9 = arith.constant 0 : index
    %10 = vector.load %arg5[%c0_8, %c0_9] : memref<1x32xf32, #tpu.memory_space<vmem>>, vector<1x32xf32>
    %11 = vector.broadcast %10 : vector<1x32xf32> to vector<8x32xf32>
    %12 = arith.addf %9, %11 : vector<8x32xf32>
    %13 = math.tanh %12 : vector<8x32xf32>
    %14 = arith.truncf %13 : vector<8x32xf32> to vector<8x32xbf16>
    %c0_10 = arith.constant 0 : index
    %c0_11 = arith.constant 0 : index
    %15 = vector.load %arg6[%c0_10, %c0_11] : memref<32x128xbf16, #tpu.memory_space<vmem>>, vector<32x128xbf16>
    %cst_12 = arith.constant dense<0.000000e+00> : vector<8x128xf32>
    %16 = tpu.matmul %14, %15, %cst_12 {dimension_numbers = #tpu.dot_dimension_numbers<[1], [0], [0], [1], [0, 0, 1, 1], [], []>} : vector<8x32xbf16>, vector<32x128xbf16>, vector<8x128xf32> -> vector<8x128xf32>
    %c0_13 = arith.constant 0 : index
    %c0_14 = arith.constant 0 : index
    %17 = vector.load %arg7[%c0_13, %c0_14] : memref<1x128xf32, #tpu.memory_space<vmem>>, vector<1x128xf32>
    %18 = vector.broadcast %17 : vector<1x128xf32> to vector<8x128xf32>
    %19 = arith.addf %16, %18 : vector<8x128xf32>
    %cst_15 = arith.constant 5.000000e-01 : f32
    %20 = vector.broadcast %cst_15 : f32 to vector<8x128xf32>
    %21 = arith.mulf %20, %19 : vector<8x128xf32>
    %22 = math.tanh %21 : vector<8x128xf32>
    %cst_16 = arith.constant 1.000000e+00 : f32
    %23 = vector.broadcast %cst_16 : f32 to vector<8x128xf32>
    %24 = arith.addf %22, %23 : vector<8x128xf32>
    %cst_17 = arith.constant 5.000000e-01 : f32
    %25 = vector.broadcast %cst_17 : f32 to vector<8x128xf32>
    %26 = arith.mulf %25, %24 : vector<8x128xf32>
    %c0_18 = arith.constant 0 : index
    %c0_19 = arith.constant 0 : index
    %27 = vector.load %arg8[%c0_18, %c0_19] : memref<8x128xf32, #tpu.memory_space<vmem>>, vector<8x128xf32>
    tpu.vector_store %arg8[%c0_18, %c0_19], %26 {strides = array<i32>} : memref<8x128xf32, #tpu.memory_space<vmem>>, vector<8x128xf32>,
    return
  }
  func.func @transform_0(%arg0: i32) -> (i32, i32) {
    %c0_i32 = arith.constant 0 : i32
    %c0_i32_0 = arith.constant 0 : i32
    return %arg0, %c0_i32 : i32, i32
  }
  func.func @transform_1(%arg0: i32) -> (i32, i32) {
    %c0_i32 = arith.constant 0 : i32
    %c0_i32_0 = arith.constant 0 : i32
    %c0_i32_1 = arith.constant 0 : i32
    return %c0_i32, %c0_i32_0 : i32, i32
  }
  func.func @transform_2(%arg0: i32) -> (i32, i32) {
    %c0_i32 = arith.constant 0 : i32
    %c0_i32_0 = arith.constant 0 : i32
    %c0_i32_1 = arith.constant 0 : i32
    return %c0_i32, %c0_i32_0 : i32, i32
  }
  func.func @transform_3(%arg0: i32) -> (i32, i32) {
    %c0_i32 = arith.constant 0 : i32
    %c0_i32_0 = arith.constant 0 : i32
    %c0_i32_1 = arith.constant 0 : i32
    return %c0_i32, %c0_i32_0 : i32, i32
  }
  func.func @transform_4(%arg0: i32) -> (i32, i32) {
    %c0_i32 = arith.constant 0 : i32
    %c0_i32_0 = arith.constant 0 : i32
    %c0_i32_1 = arith.constant 0 : i32
    return %c0_i32, %c0_i32_0 : i32, i32
  }
  func.func @transform_5(%arg0: i32) -> (i32, i32) {
    %c0_i32 = arith.constant 0 : i32
    %c0_i32_0 = arith.constant 0 : i32
    %c0_i32_1 = arith.constant 0 : i32
    return %c0_i32, %c0_i32_0 : i32, i32
  }
  func.func @transform_6(%arg0: i32) -> (i32, i32) {
    %c0_i32 = arith.constant 0 : i32
    %c0_i32_0 = arith.constant 0 : i32
    %c0_i32_1 = arith.constant 0 : i32
    return %c0_i32, %c0_i32_0 : i32, i32
  }
  func.func @transform_7(%arg0: i32) -> (i32, i32) {
    %c0_i32 = arith.constant 0 : i32
    %c0_i32_0 = arith.constant 0 : i32
    return %arg0, %c0_i32 : i32, i32
  }
}

</mosaic_0001>

<bundles_post_ra>
// kernel: tpu_custom_call.1
= control target key start
LH: loop header
LB: loop body
LE: loop exit
PB: predicated region body
PF: predicated region fallthrough
CT: control target
= control target key end

     0   :  { %vm41_vm0 = vcmask 130048   ;;  %s324_s0 = inlined_call_operand.vmem [shape: bf16[8,16], index: 0, kind: input, shape index: {}]   ;;  %s325_s1 = inlined_call_operand.vmem [shape: bf16[16,64], index: 1, kind: input, shape index: {}]   ;;  %s326_s2 = inlined_call_operand.vmem [shape: f32[1,64], index: 2, kind: input, shape index: {}]   ;;  %s327_s3 = inlined_call_operand.vmem [shape: bf16[64,32], index: 3, kind: input, shape index: {}]   ;;  %s328_s4 = inlined_call_operand.vmem [shape: f32[1,32], index: 4, kind: input, shape index: {}]   ;;  %s329_s5 = inlined_call_operand.vmem [shape: bf16[32,128], index: 5, kind: input, shape index: {}]   ;;  %s330_s6 = inlined_call_operand.vmem [shape: f32[1,128], index: 6, kind: input, shape index: {}]   ;;  %s331_s7 = inlined_call_operand.hbm [shape: f32[8,128], index: 7, kind: output, shape index: {}]  }
   0x1   :  { %v204_v0 = vld [vmem:[%s325_s1] sm:$0xff]  ;;  %v208_v1 = vld [vmem:[%s327_s3 + $0x18] sm:$0xff] }
   0x2   :  { %v28_v2 = vld [vmem:[%s324_s0] sm:$0xf]  ;;  %52 = vmatpush.bf16.msra.mxu0 %v204_v0  ;;  %104 = vmatpush.bf16.msra.mxu1 %v208_v1 }
   0x3   :  { %12 = vsyncpa [#allocation3], 0  ;;  %v207_v3 = vld [vmem:[%s327_s3 + $0x10] sm:$0xff]  ;;  %v206_v4 = vld [vmem:[%s327_s3 + $0x8] sm:$0xff]  ;;  %vm96_vm1 = vcmask 523264   ;;  %vm135_vm2 = vcmask 261120  }
   0x4   :  { %v205_v5 = vld [vmem:[%s327_s3] sm:$0xff]  ;;  %v210_v12 = vld [vmem:[%s329_s5 + $0x8] sm:$0xff]  ;;  %s164_s21 = sshll.u32 %s331_s7, 4  ;;  %s165_s21 = int_to_ptr.hbm [resolvable:$true] %s164_s21 }
   0x5   :  { %177 = vmatmul.msk.bf16.vlgmr.msra.gmra.mxu0 %vm41_vm0, %v28_v2  ;;  %v212_v6 = vld [vmem:[%s326_s2] ss:$0 sm:$0xff]  ;;  %145 = vmatpush.bf16.msra.mxu2 %v210_v12 }
   0x6   :  { %105 = vmatpush.bf16.msra.mxu1 %v207_v3  ;;  %v209_v13 = vld [vmem:[%s329_s5] sm:$0xff]  ;;  %s247_s5 = smov [#allocation2]  }
   0x7   :  { %v213_v14 = vld [vmem:[%s328_s4] ss:$0 sm:$0xff]  ;;  %s162_s4 = sshll.u32 %s247_s5, 4  ;;  %s163_s4 = int_to_ptr.vmem [resolvable:$true] %s162_s4 }
   0x8   :  { %v214_v20 = vld [vmem:[%s330_s6] ss:$0 sm:$0xff] }
   0x9   :  { %146 = vmatpush.bf16.msra.mxu2 %v209_v13 }
   0xa   :  { %106 = vmatpush.bf16.msra.mxu1 %v206_v4 }
   0xe   :  { %107 = vmatpush.bf16.msra.mxu1 %v205_v5 }
  0x82   :  { %v54_v7 = vpop.f32.mrf.mxu0 }
  0x83   :  { %v55_v8 = vadd.f32 %v212_v6, %v54_v7 }
  0x85   :  { %215 = vtanh.f32 %v55_v8 }
  0x8a   :  { %v56_v9 = vpop.f32.mrf.mxu0 }
  0x8b   :  { %v216_v10 = vpop.eup %215 }
  0x8c   :  { %v59_v11 = vpack.c.bf16 %v216_v10, %v216_v10 }
  0x8e   :  { %194 = vmatmul.msk.bf16.vlgmr.msra.gmra.mxu1 %vm96_vm1, %v59_v11 }
 0x10b   :  { %v109_v15 = vpop.f32.mrf.mxu1 }
 0x10c   :  { %v110_v16 = vadd.f32 %v213_v14, %v109_v15 }
 0x10e   :  { %217 = vtanh.f32 %v110_v16 }
 0x113   :  { %v111_v17 = vpop.f32.mrf.mxu1 }
 0x114   :  { %v218_v18 = vpop.eup %217 }
 0x115   :  { %v114_v19 = vpack.c.bf16 %v218_v18, %v218_v18 }
 0x117   :  { %203 = vmatmul.msk.bf16.vlgmr.msra.gmra.mxu2 %vm135_vm2, %v114_v19 }
 0x19a   :  { %v148_v21 = vpop.f32.mrf.mxu2 }
 0x19b   :  { %v149_v22 = vadd.f32 %v214_v20, %v148_v21 }
 0x19d   :  { %v152_v23 = vmul.f32 0.5, %v149_v22 }
 0x19f   :  { %219 = vtanh.f32 %v152_v23 }
 0x1a2   :  { %v150_v24 = vpop.f32.mrf.mxu2 }
 0x1a5   :  { %v220_v25 = vpop.eup %219 }
 0x1a6   :  { %v154_v26 = vadd.f32 1.0, %v220_v25 }
 0x1a8   :  { %v155_v27 = vmul.f32 0.5, %v154_v26 }
 0x1aa   :  { %156 = vst [vmem:[#allocation2] sm:$0xff] %v155_v27 }
 0x1ab   :  { %167 = dma.vmem_to_hbm [thread:$0]  %s163_s4, 128, %s165_s21, [#allocation3]  }
 0x1ac   :  { %245 = dma.done.wait [#allocation3], 128  }
 0x1ad   :  { %246 = vsyncadd [#allocation3], 4294967168 }
 0x1ae   :  { %172 = vsyncpa [#allocation3], 1 }

</bundles_post_ra>
